<compile_context>
chip_gen: v5e
topology: v5e:2x2
jax: 0.10.0
libtpu: 0.0.40
codegen_flags: <defaults>
</compile_context>

<pallas_src>
import jax
import jax.numpy as jnp
from jax.experimental import pallas as pl
from jax.experimental.pallas import tpu as pltpu

B = 256   # batch
D = 32    # feature_dim


def _gelu_tanh(x):
    # tanh-approximate GELU (assumed EmergenceCore activation; one EUP tanh)
    c = 0.7978845608028654  # sqrt(2/pi)
    return 0.5 * x * (1.0 + jnp.tanh(c * (x + 0.044715 * x * x * x)))


def _cde_kernel(x_ref, w_ref, b_ref, temp_ref, out_ref):
    """Feature-major (batch-as-lanes) fused forward pass.

    x_ref   : (D,  tb) bf16   combined_features^T tile
    w_ref   : (4D, D)  bf16   [we1^T ; wv^T ; we2^T ; wo^T]
    b_ref   : (4D, 1)  f32    [be1 ; bv ; be2 ; bo]
    temp_ref: (1, 1)   f32    temperature (SMEM)
    out_ref : (2D, tb) f32    rows [0,D) = distribution^T, rows [D,2D) = state^T
    """
    f32 = jnp.float32
    d = x_ref.shape[0]

    x = x_ref[...]                                            # (D, tb) bf16

    # ---- stage 1: fused [EmergenceCore.fc1 ; CrossModalAttention.W_v] -------
    y1 = (jnp.dot(w_ref[0:2 * d, :], x, preferred_element_type=f32)
          + b_ref[0:2 * d, :])                                # (2D, tb) f32

    h = _gelu_tanh(y1[0:d, :])                                # emergence hidden half
    v = y1[d:2 * d, :]                                        # attention value path

    # ---- stage 2: EmergenceCore.fc2 and CrossModalAttention.W_o -------------
    state_pre = (jnp.dot(w_ref[2 * d:3 * d, :], h.astype(w_ref.dtype),
                         preferred_element_type=f32)
                 + b_ref[2 * d:3 * d, :])                     # (D, tb)
    attn = (jnp.dot(w_ref[3 * d:4 * d, :], v.astype(w_ref.dtype),
                    preferred_element_type=f32)
            + b_ref[3 * d:4 * d, :])                          # (D, tb)

    state = jax.nn.sigmoid(state_pre)                         # emergence_state^T

    # ---- distribution = softmax(attn / (clamp(temp) * state), over features) ---
    temp = jnp.maximum(temp_ref[0, 0], 0.001)                 # torch.clamp(min=1e-3)
    logits = attn / (temp * state)                            # exact divide
    m = jnp.max(logits, axis=0, keepdims=True)                # feature axis = sublanes
    e = jnp.exp(logits - m)
    dist = e * pl.reciprocal(jnp.sum(e, axis=0, keepdims=True), approx=True)

    out_ref[0:d, :] = dist
    out_ref[d:2 * d, :] = state


def make_params(key, feature_dim=D):
    """PyTorch-style Linear params, packed transposed (feature-major) for the kernel."""
    keys = jax.random.split(key, 4)

    def lin(k, fin, fout):
        kw, kb = jax.random.split(k)
        bound = 1.0 / (fin ** 0.5)
        w = jax.random.uniform(kw, (fin, fout), jnp.float32, -bound, bound)
        b = jax.random.uniform(kb, (fout,), jnp.float32, -bound, bound)
        return w, b

    d = feature_dim
    we1, be1 = lin(keys[0], d, d)   # EmergenceCore fc1 (assumed)
    we2, be2 = lin(keys[1], d, d)   # EmergenceCore fc2 (assumed)
    wv, bv = lin(keys[2], d, d)     # CrossModalAttention W_v (assumed)
    wo, bo = lin(keys[3], d, d)     # CrossModalAttention W_o (assumed)

    # one (4D, D) bf16 weight slab, one (4D, 1) f32 bias slab
    w_slab = jnp.concatenate([we1.T, wv.T, we2.T, wo.T], axis=0).astype(jnp.bfloat16)
    b_slab = jnp.concatenate([be1, bv, be2, bo], axis=0).reshape(4 * d, 1)
    temperature = jnp.full((1, 1), 0.1, jnp.float32)          # nn.Parameter(ones(1)*0.1)
    return w_slab, b_slab, temperature


def _num_grid_tiles(batch):
    """grid=(2,) only on v7x (2 TensorCores/chip); one grid step elsewhere."""
    try:
        kind = jax.devices()[0].device_kind.lower()
        two_tc = "v7" in kind
    except Exception:
        two_tc = False
    if two_tc and batch % 256 == 0:
        return 2
    return 1


@jax.jit
def critical_distribution_estimator(combined_features, w_slab, b_slab, temperature):
    b, d = combined_features.shape
    n_tiles = _num_grid_tiles(b)
    tile_b = b // n_tiles

    # lane-dense layout: batch on the lane (last) axis; bf16 input halves DMA bytes
    x_t = combined_features.T.astype(jnp.bfloat16)            # (D, B)

    grid_spec = pltpu.PrefetchScalarGridSpec(
        num_scalar_prefetch=0,
        grid=(n_tiles,),
        in_specs=[
            pl.BlockSpec((d, tile_b), lambda i: (0, i)),
            # constant-index blocks -> fetched once, stay VMEM-resident
            pl.BlockSpec((4 * d, d), lambda i: (0, 0)),
            pl.BlockSpec((4 * d, 1), lambda i: (0, 0)),
            pl.BlockSpec((1, 1), lambda i: (0, 0),
                         memory_space=pltpu.MemorySpace.SMEM),
        ],
        out_specs=pl.BlockSpec((2 * d, tile_b), lambda i: (0, i)),
    )
    out = pl.pallas_call(
        _cde_kernel,
        out_shape=jax.ShapeDtypeStruct((2 * d, b), jnp.float32),
        grid_spec=grid_spec,
        compiler_params=pltpu.CompilerParams(
            dimension_semantics=("parallel",)),
    )(x_t, w_slab, b_slab, temperature)

    distribution = out[:d, :].T                                # (B, D)
    emergence_state = out[d:, :].T                             # (B, D)
    return distribution, emergence_state


if __name__ == "__main__":
    key = jax.random.PRNGKey(0)
    k_params, k_x = jax.random.split(key)
    w_slab, b_slab, temperature = make_params(k_params)

    # synthetic stand-in for `combined_features`
    combined_features = jax.random.normal(k_x, (B, D), jnp.float32)

    distribution, emergence_state = critical_distribution_estimator(
        combined_features, w_slab, b_slab, temperature)
    jax.block_until_ready((distribution, emergence_state))

    print("KERNEL_OK")
</pallas_src>

<mosaic_0001>
module attributes {stable_mosaic.version = 11 : i64} {
  func.func @_cde_kernel(%arg0: i32, %arg1: memref<32x256xbf16, #tpu.memory_space<vmem>>, %arg2: memref<128x32xbf16, #tpu.memory_space<vmem>>, %arg3: memref<128x1xf32, #tpu.memory_space<vmem>>, %arg4: memref<1x1xf32, #tpu.memory_space<smem>>, %arg5: memref<64x256xf32, #tpu.memory_space<vmem>>) attributes {dimension_semantics = [#tpu.dimension_semantics<parallel>], iteration_bounds = array<i64: 1>, scalar_prefetch = 0 : i64, scratch_operands = 0 : i64, tpu.core_type = #tpu.core_type<tc>, window_params = [{transform_indices = @transform_0, window_bounds = array<i64: 32, 256>}, {pipeline_mode = #tpu.pipeline_mode<synchronous>, transform_indices = @transform_1, window_bounds = array<i64: 128, 32>}, {pipeline_mode = #tpu.pipeline_mode<synchronous>, transform_indices = @transform_2, window_bounds = array<i64: 128, 1>}, {transform_indices = @transform_3, window_bounds = array<i64: 1, 1>}, {transform_indices = @transform_4, window_bounds = array<i64: 64, 256>}]} {
    %c0 = arith.constant 0 : index
    %c0_0 = arith.constant 0 : index
    %0 = vector.load %arg1[%c0, %c0_0] : memref<32x256xbf16, #tpu.memory_space<vmem>>, vector<32x256xbf16>
    %c0_1 = arith.constant 0 : index
    %c0_2 = arith.constant 0 : index
    %1 = vector.load %arg2[%c0_1, %c0_2] : memref<128x32xbf16, #tpu.memory_space<vmem>>, vector<64x32xbf16>
    %cst = arith.constant dense<0.000000e+00> : vector<64x256xf32>
    %2 = tpu.matmul %1, %0, %cst {dimension_numbers = #tpu.dot_dimension_numbers<[1], [0], [0], [1], [0, 0, 1, 1], [], []>} : vector<64x32xbf16>, vector<32x256xbf16>, vector<64x256xf32> -> vector<64x256xf32>
    %c0_3 = arith.constant 0 : index
    %c0_4 = arith.constant 0 : index
    %3 = vector.load %arg3[%c0_3, %c0_4] : memref<128x1xf32, #tpu.memory_space<vmem>>, vector<64x1xf32>
    %4 = vector.broadcast %3 : vector<64x1xf32> to vector<64x256xf32>
    %5 = arith.addf %2, %4 : vector<64x256xf32>
    %6 = vector.extract_strided_slice %5 {offsets = [0, 0], sizes = [32, 256], strides = [1, 1]} : vector<64x256xf32> to vector<32x256xf32>
    %cst_5 = arith.constant 5.000000e-01 : f32
    %7 = vector.broadcast %cst_5 : f32 to vector<32x256xf32>
    %8 = arith.mulf %7, %6 : vector<32x256xf32>
    %cst_6 = arith.constant 4.471500e-02 : f32
    %9 = vector.broadcast %cst_6 : f32 to vector<32x256xf32>
    %10 = arith.mulf %9, %6 : vector<32x256xf32>
    %11 = arith.mulf %10, %6 : vector<32x256xf32>
    %12 = arith.mulf %11, %6 : vector<32x256xf32>
    %13 = arith.addf %6, %12 : vector<32x256xf32>
    %cst_7 = arith.constant 0.797884583 : f32
    %14 = vector.broadcast %cst_7 : f32 to vector<32x256xf32>
    %15 = arith.mulf %14, %13 : vector<32x256xf32>
    %16 = math.tanh %15 : vector<32x256xf32>
    %cst_8 = arith.constant 1.000000e+00 : f32
    %17 = vector.broadcast %cst_8 : f32 to vector<32x256xf32>
    %18 = arith.addf %17, %16 : vector<32x256xf32>
    %19 = arith.mulf %8, %18 : vector<32x256xf32>
    %20 = vector.extract_strided_slice %5 {offsets = [32, 0], sizes = [32, 256], strides = [1, 1]} : vector<64x256xf32> to vector<32x256xf32>
    %c64 = arith.constant 64 : index
    %c0_9 = arith.constant 0 : index
    %21 = vector.load %arg2[%c64, %c0_9] : memref<128x32xbf16, #tpu.memory_space<vmem>>, vector<32x32xbf16>
    %22 = arith.truncf %19 : vector<32x256xf32> to vector<32x256xbf16>
    %cst_10 = arith.constant dense<0.000000e+00> : vector<32x256xf32>
    %23 = tpu.matmul %21, %22, %cst_10 {dimension_numbers = #tpu.dot_dimension_numbers<[1], [0], [0], [1], [0, 0, 1, 1], [], []>} : vector<32x32xbf16>, vector<32x256xbf16>, vector<32x256xf32> -> vector<32x256xf32>
    %c64_11 = arith.constant 64 : index
    %c0_12 = arith.constant 0 : index
    %24 = vector.load %arg3[%c64_11, %c0_12] : memref<128x1xf32, #tpu.memory_space<vmem>>, vector<32x1xf32>
    %25 = vector.broadcast %24 : vector<32x1xf32> to vector<32x256xf32>
    %26 = arith.addf %23, %25 : vector<32x256xf32>
    %c96 = arith.constant 96 : index
    %c0_13 = arith.constant 0 : index
    %27 = vector.load %arg2[%c96, %c0_13] : memref<128x32xbf16, #tpu.memory_space<vmem>>, vector<32x32xbf16>
    %28 = arith.truncf %20 : vector<32x256xf32> to vector<32x256xbf16>
    %cst_14 = arith.constant dense<0.000000e+00> : vector<32x256xf32>
    %29 = tpu.matmul %27, %28, %cst_14 {dimension_numbers = #tpu.dot_dimension_numbers<[1], [0], [0], [1], [0, 0, 1, 1], [], []>} : vector<32x32xbf16>, vector<32x256xbf16>, vector<32x256xf32> -> vector<32x256xf32>
    %c96_15 = arith.constant 96 : index
    %c0_16 = arith.constant 0 : index
    %30 = vector.load %arg3[%c96_15, %c0_16] : memref<128x1xf32, #tpu.memory_space<vmem>>, vector<32x1xf32>
    %31 = vector.broadcast %30 : vector<32x1xf32> to vector<32x256xf32>
    %32 = arith.addf %29, %31 : vector<32x256xf32>
    %33 = arith.negf %26 : vector<32x256xf32>
    %34 = math.exp %33 : vector<32x256xf32>
    %cst_17 = arith.constant 1.000000e+00 : f32
    %35 = vector.broadcast %cst_17 : f32 to vector<32x256xf32>
    %36 = arith.addf %35, %34 : vector<32x256xf32>
    %37 = arith.divf %35, %36 : vector<32x256xf32>
    %c0_18 = arith.constant 0 : index
    %c0_19 = arith.constant 0 : index
    %38 = memref.load %arg4[%c0_18, %c0_19] : memref<1x1xf32, #tpu.memory_space<smem>>
    %cst_20 = arith.constant 1.000000e-03 : f32
    %39 = arith.maximumf %38, %cst_20 : f32
    %40 = vector.broadcast %39 : f32 to vector<32x256xf32>
    %41 = arith.mulf %40, %37 : vector<32x256xf32>
    %42 = arith.divf %32, %41 : vector<32x256xf32>
    %cst_21 = arith.constant dense<0xFF800000> : vector<256xf32>
    %43 = vector.multi_reduction <maximumf>, %42, %cst_21 [0] : vector<32x256xf32> to vector<256xf32>
    %44 = vector.shape_cast %43 : vector<256xf32> to vector<1x256xf32>
    %45 = vector.broadcast %44 : vector<1x256xf32> to vector<32x256xf32>
    %46 = arith.subf %42, %45 : vector<32x256xf32>
    %47 = math.exp %46 : vector<32x256xf32>
    %cst_22 = arith.constant dense<0.000000e+00> : vector<256xf32>
    %48 = vector.multi_reduction <add>, %47, %cst_22 [0] : vector<32x256xf32> to vector<256xf32>
    %49 = vector.shape_cast %48 : vector<256xf32> to vector<1x256xf32>
    %50 = tpu.reciprocal %49 {approx = true} : vector<1x256xf32> -> vector<1x256xf32>
    %51 = vector.broadcast %50 : vector<1x256xf32> to vector<32x256xf32>
    %52 = arith.mulf %47, %51 : vector<32x256xf32>
    %c0_23 = arith.constant 0 : index
    %c0_24 = arith.constant 0 : index
    %53 = vector.load %arg5[%c0_23, %c0_24] : memref<64x256xf32, #tpu.memory_space<vmem>>, vector<32x256xf32>
    tpu.vector_store %arg5[%c0_23, %c0_24], %52 {strides = array<i32>} : memref<64x256xf32, #tpu.memory_space<vmem>>, vector<32x256xf32>,
    %c32 = arith.constant 32 : index
    %c0_25 = arith.constant 0 : index
    %54 = vector.load %arg5[%c32, %c0_25] : memref<64x256xf32, #tpu.memory_space<vmem>>, vector<32x256xf32>
    tpu.vector_store %arg5[%c32, %c0_25], %37 {strides = array<i32>} : memref<64x256xf32, #tpu.memory_space<vmem>>, vector<32x256xf32>,
    return
  }
  func.func @transform_0(%arg0: i32) -> (i32, i32) {
    %c0_i32 = arith.constant 0 : i32
    %c0_i32_0 = arith.constant 0 : i32
    return %c0_i32, %arg0 : i32, i32
  }
  func.func @transform_1(%arg0: i32) -> (i32, i32) {
    %c0_i32 = arith.constant 0 : i32
    %c0_i32_0 = arith.constant 0 : i32
    %c0_i32_1 = arith.constant 0 : i32
    return %c0_i32, %c0_i32_0 : i32, i32
  }
  func.func @transform_2(%arg0: i32) -> (i32, i32) {
    %c0_i32 = arith.constant 0 : i32
    %c0_i32_0 = arith.constant 0 : i32
    %c0_i32_1 = arith.constant 0 : i32
    return %c0_i32, %c0_i32_0 : i32, i32
  }
  func.func @transform_3(%arg0: i32) -> (i32, i32) {
    %c0_i32 = arith.constant 0 : i32
    %c0_i32_0 = arith.constant 0 : i32
    %c0_i32_1 = arith.constant 0 : i32
    return %c0_i32, %c0_i32_0 : i32, i32
  }
  func.func @transform_4(%arg0: i32) -> (i32, i32) {
    %c0_i32 = arith.constant 0 : i32
    %c0_i32_0 = arith.constant 0 : i32
    return %c0_i32, %arg0 : i32, i32
  }
}

</mosaic_0001>

<bundles_post_ra>
// kernel: critical_distribution_estimator.1
= control target key start
LH: loop header
LB: loop body
LE: loop exit
PB: predicated region body
PF: predicated region fallthrough
CT: control target
= control target key end

     0   :  { %v980_v0 = vmov 0   ;;  %vm119_vm0 = vcmask 261120   ;;  %s1473_s2 = inlined_call_operand.vmem [shape: f32[128,1], index: 2, kind: input, shape index: {}]   ;;  %s1474_s0 = inlined_call_operand.vmem [shape: bf16[32,256], index: 0, kind: input, shape index: {}]   ;;  %s1475_s1 = inlined_call_operand.vmem [shape: bf16[128,32], index: 1, kind: input, shape index: {}]   ;;  %s1476_s3 = inlined_call_operand.<no memory space> [shape: f32[1,1], index: 3, kind: input, shape index: {}]   ;;  %s1477_s4 = inlined_call_operand.vmem [shape: f32[64,256], index: 4, kind: output, shape index: {}]  }
   0x1   :  { %893 = vset.pattern.permute.xlu0 %v980_v0  ;;  %v33_v1 = vld [vmem:[%s1473_s2 + $0x10] sm:$0xff]  ;;  %v882_v3 = vld [vmem:[%s1474_s0 + $0x14] sm:$0xf0]  ;;  %894 = vset.pattern.permute.xlu1 %v980_v0  ;;  %v835_v6 = vld [vmem:[%s1474_s0 + $0x18] sm:$0xf0] }
   0x2   :  { %v833_v2 = vld [vmem:[%s1474_s0 + $0x10] sm:$0xf]  ;;  %51 = vperm.xlu0 %893, %v33_v1   ;;  %v881_v5 = vld [vmem:[%s1474_s0 + $0x14] sm:$0xf]  ;;  %v825_v7 = vld [vmem:[%s1474_s0] sm:$0xf]  ;;  %895 = vset.pattern.permute.xlu2 %v980_v0 }
   0x3   :  { %v834_v4 = vor.u32 %v882_v3, %v833_v2  ;;  %v838_v8 = vor.u32 %v881_v5, %v835_v6  ;;  %v880_v9 = vld [vmem:[%s1474_s0 + $0x4] sm:$0xf0]  ;;  %v879_v10 = vld [vmem:[%s1474_s0 + $0x4] sm:$0xf]  ;;  %v827_v11 = vld [vmem:[%s1474_s0 + $0x8] sm:$0xf0] }
   0x4   :  { %v826_v12 = vor.u32 %v880_v9, %v825_v7  ;;  %v31_v13 = vld [vmem:[%s1473_s2] sm:$0xff]  ;;  %v830_v14 = vor.u32 %v879_v10, %v827_v11  ;;  %v34_v15 = vld [vmem:[%s1473_s2 + $0x18] sm:$0xff]  ;;  %v32_v17 = vld [vmem:[%s1473_s2 + $0x8] sm:$0xff] }
   0x5   :  { %138 = vmatpush.bf16.msra.mxu0 %v834_v4  ;;  %167 = vmatpush.bf16.msra.mxu1 %v838_v8  ;;  %v883_v16 = vld [vmem:[%s1475_s1] sm:$0xff]  ;;  %v36_v19 = vld [vmem:[%s1473_s2 + $0x28] sm:$0xff]  ;;  %v272_v22 = vld [vmem:[%s1473_s2 + $0x50] sm:$0xff] }
   0x6   :  { %41 = vperm.xlu1 %894, %v31_v13   ;;  %v35_v18 = vld [vmem:[%s1473_s2 + $0x20] sm:$0xff]  ;;  %v271_v20 = vld [vmem:[%s1473_s2 + $0x48] sm:$0xff]  ;;  %v37_v23 = vld [vmem:[%s1473_s2 + $0x30] sm:$0xff] }
   0x7   :  { %v884_v21 = vld [vmem:[%s1475_s1 + $0x8] sm:$0xff]  ;;  %71 = vperm.xlu2 %895, %v37_v23   ;;  %v356_v24 = vld [vmem:[%s1473_s2 + $0x60] sm:$0xff]  ;;  %v38_v26 = vld [vmem:[%s1473_s2 + $0x38] sm:$0xff] }
   0x8   :  { %v357_v25 = vld [vmem:[%s1473_s2 + $0x68] sm:$0xff]  ;;  %v359_v27 = vld [vmem:[%s1473_s2 + $0x78] sm:$0xff]  ;;  %v885_v28 = vld [vmem:[%s1475_s1 + $0x10] sm:$0xff] }
   0x9   :  { %139 = vmatpush.bf16.msra.mxu0 %v826_v12  ;;  %168 = vmatpush.bf16.msra.mxu1 %v830_v14  ;;  %v270_v29 = vld [vmem:[%s1473_s2 + $0x40] sm:$0xff]  ;;  %v273_v30 = vld [vmem:[%s1473_s2 + $0x58] sm:$0xff]  ;;  %v358_v32 = vld [vmem:[%s1473_s2 + $0x70] sm:$0xff] }
   0xa   :  { %56 = vperm.xlu0 %893, %v34_v15   ;;  %v886_v31 = vld [vmem:[%s1475_s1 + $0x18] sm:$0xff] }
   0xc   :  { %839 = vmatmul.msk.bf16.vlgmr.msra.gmra.mxu0 %vm119_vm0, %v883_v16  ;;  %843 = vmatmul.msk.bf16.vlgmr.msra.gmra.mxu1 %vm119_vm0, %v883_v16 }
   0xe   :  { %46 = vperm.xlu1 %894, %v32_v17  }
   0xf   :  { %76 = vperm.xlu2 %895, %v38_v26  }
  0x12   :  { %61 = vperm.xlu0 %893, %v35_v18  }
  0x16   :  { %66 = vperm.xlu1 %894, %v36_v19  }
  0x17   :  { %276 = vperm.xlu2 %895, %v270_v29  }
  0x1a   :  { %281 = vperm.xlu0 %893, %v271_v20  }
  0x1c   :  { %840 = vmatmul.msk.bf16.gmra.mxu0 %vm119_vm0, %v884_v21  ;;  %844 = vmatmul.msk.bf16.gmra.mxu1 %vm119_vm0, %v884_v21 }
  0x1e   :  { %286 = vperm.xlu1 %894, %v272_v22  }
  0x1f   :  { %291 = vperm.xlu2 %895, %v273_v30  }
  0x22   :  { %362 = vperm.xlu0 %893, %v356_v24  }
  0x26   :  { %367 = vperm.xlu1 %894, %v357_v25  }
  0x27   :  { %372 = vperm.xlu2 %895, %v358_v32  }
  0x2a   :  { %377 = vperm.xlu0 %893, %v359_v27  }
  0x2c   :  { %841 = vmatmul.msk.bf16.gmra.mxu0 %vm119_vm0, %v885_v28  ;;  %845 = vmatmul.msk.bf16.gmra.mxu1 %vm119_vm0, %v885_v28 }
  0x3c   :  { %842 = vmatmul.msk.bf16.gmra.mxu0 %vm119_vm0, %v886_v31  ;;  %846 = vmatmul.msk.bf16.gmra.mxu1 %vm119_vm0, %v886_v31 }
  0x74   :  { %v52_v45 = vpop.permute.xlu0 %51 }
  0x78   :  { %v42_v33 = vpop.permute.xlu1 %41 }
  0x7c   :  { %v57_v1 = vpop.permute.xlu0 %56 }
  0x80   :  { %v47_v40 = vpop.permute.xlu1 %46 }
  0x89   :  { %v141_v34 = vpop.f32.mrf.mxu0  ;;  %v170_v35 = vpop.f32.mrf.mxu1 }
  0x8a   :  { %v1099_v36 = vadd.f32 %v141_v34, %v42_v33  ;;  %v1101_v37 = vadd.f32 %v170_v35, %v42_v33 }
  0x8c   :  { %v198_v41 = vmul.f32 0.044715, %v1099_v36  ;;  %v199_v43 = vmul.f32 0.044715, %v1101_v37 }
  0x8e   :  { %v206_v47 = vmul.f32 %v198_v41, %v1099_v36  ;;  %v207_v50 = vmul.f32 %v199_v43, %v1101_v37 }
  0x90   :  { %v214_v56 = vmul.f32 %v206_v47, %v1099_v36  ;;  %v215_v59 = vmul.f32 %v207_v50, %v1101_v37  ;;  %v72_v47 = vpop.permute.xlu2 %71 }
  0x91   :  { %v143_v38 = vpop.f32.mrf.mxu0  ;;  %v172_v39 = vpop.f32.mrf.mxu1 }
  0x92   :  { %v1104_v42 = vadd.f32 %v143_v38, %v47_v40  ;;  %v1107_v44 = vadd.f32 %v172_v39, %v47_v40  ;;  %v222_v0 = vadd.f32 %v214_v56, %v1099_v36  ;;  %v223_v5 = vadd.f32 %v215_v59, %v1101_v37 }
  0x94   :  { %v200_v46 = vmul.f32 0.044715, %v1104_v42  ;;  %v201_v48 = vmul.f32 0.044715, %v1107_v44  ;;  %v230_v13 = vmul.f32 0.7978846, %v222_v0 }
  0x95   :  { %v231_v16 = vmul.f32 0.7978846, %v223_v5  ;;  %v193_v0 = vmul.f32 0.5, %v1107_v44 }
  0x96   :  { %v208_v55 = vmul.f32 %v200_v46, %v1104_v42  ;;  %v209_v58 = vmul.f32 %v201_v48, %v1107_v44  ;;  %896 = vtanh.f32 %v230_v13 }
  0x97   :  { %898 = vtanh.f32 %v231_v16 }
  0x98   :  { %v216_v63 = vmul.f32 %v208_v55, %v1104_v42  ;;  %v217_v4 = vmul.f32 %v209_v58, %v1107_v44 }
  0x99   :  { %v146_v49 = vpop.f32.mrf.mxu0  ;;  %v175_v52 = vpop.f32.mrf.mxu1 }
  0x9a   :  { %v1113_v51 = vadd.f32 %v146_v49, %v52_v45  ;;  %v1115_v53 = vadd.f32 %v175_v52, %v52_v45  ;;  %v224_v12 = vadd.f32 %v216_v63, %v1104_v42  ;;  %v225_v15 = vadd.f32 %v217_v4, %v1107_v44  ;;  %v887_v44 = vld [vmem:[%s1475_s1 + $0x20] sm:$0xff] }
  0x9c   :  { %v202_v54 = vmul.f32 0.044715, %v1113_v51  ;;  %v203_v57 = vmul.f32 0.044715, %v1115_v53  ;;  %v232_v22 = vmul.f32 0.7978846, %v224_v12  ;;  %v897_v31 = vpop.eup %896 }
  0x9d   :  { %v233_v25 = vmul.f32 0.7978846, %v225_v15  ;;  %v899_v32 = vpop.eup %898  ;;  %v194_v48 = vmul.f32 0.5, %v1113_v51 }
  0x9e   :  { %v210_v60 = vmul.f32 %v202_v54, %v1113_v51  ;;  %v211_v61 = vmul.f32 %v203_v57, %v1115_v53  ;;  %v195_v54 = vmul.f32 0.5, %v1115_v53 }
  0xa0   :  { %v218_v62 = vmul.f32 %v210_v60, %v1113_v51  ;;  %v219_v3 = vmul.f32 %v211_v61, %v1115_v53  ;;  %v192_v60 = vmul.f32 0.5, %v1104_v42  ;;  %v246_v61 = vadd.f32 1.0, %v897_v31 }
  0xa1   :  { %v148_v2 = vpop.f32.mrf.mxu0  ;;  %v177_v7 = vpop.f32.mrf.mxu1 }
  0xa2   :  { %v149_v6 = vadd.f32 %v148_v2, %v57_v1  ;;  %v226_v8 = vadd.f32 %v218_v62, %v1113_v51  ;;  %v178_v9 = vadd.f32 %v177_v7, %v57_v1  ;;  %v227_v10 = vadd.f32 %v219_v3, %v1115_v53 }
  0xa3   :  { %v247_v1 = vadd.f32 1.0, %v899_v32  ;;  %v190_v3 = vmul.f32 0.5, %v1099_v36 }
  0xa4   :  { %v204_v11 = vmul.f32 0.044715, %v149_v6  ;;  %v205_v14 = vmul.f32 0.044715, %v178_v9  ;;  %v234_v18 = vmul.f32 0.7978846, %v226_v8 }
  0xa5   :  { %v235_v20 = vmul.f32 0.7978846, %v227_v10  ;;  %v196_v49 = vmul.f32 0.5, %v149_v6  ;;  %v197_v55 = vmul.f32 0.5, %v178_v9  ;;  %v254_v8 = vmul.f32 %v246_v61, %v190_v3 }
  0xa6   :  { %v212_v17 = vmul.f32 %v204_v11, %v149_v6  ;;  %v213_v19 = vmul.f32 %v205_v14, %v178_v9  ;;  %900 = vtanh.f32 %v234_v18  ;;  %v77_v11 = vpop.permute.xlu2 %76 }
  0xa7   :  { %902 = vtanh.f32 %v235_v20 }
  0xa8   :  { %v220_v21 = vmul.f32 %v212_v17, %v149_v6  ;;  %v221_v24 = vmul.f32 %v213_v19, %v178_v9  ;;  %904 = vtanh.f32 %v232_v22  ;;  %v62_v19 = vpop.permute.xlu0 %61 }
  0xa9   :  { %v1135_v23 = vpop.f32.mrf.mxu0  ;;  %v1137_v26 = vpop.f32.mrf.mxu1  ;;  %906 = vtanh.f32 %v233_v25 }
  0xaa   :  { %v228_v27 = vadd.f32 %v220_v21, %v149_v6  ;;  %v229_v28 = vadd.f32 %v221_v24, %v178_v9  ;;  %v191_v6 = vmul.f32 0.5, %v1101_v37  ;;  %v67_v37 = vpop.permute.xlu1 %66  ;;  %v152_v22 = vadd.f32 %v1135_v23, %v62_v19  ;;  %v889_v23 = vld [vmem:[%s1475_s1 + $0x30] sm:$0xff] }
  0xab   :  { %v181_v24 = vadd.f32 %v1137_v26, %v62_v19  ;;  %v890_v26 = vld [vmem:[%s1475_s1 + $0x38] sm:$0xff] }
  0xac   :  { %v236_v29 = vmul.f32 0.7978846, %v228_v27  ;;  %v237_v30 = vmul.f32 0.7978846, %v229_v28  ;;  %v901_v33 = vpop.eup %900  ;;  %v255_v42 = vmul.f32 %v247_v1, %v191_v6  ;;  %v888_v28 = vld [vmem:[%s1475_s1 + $0x28] sm:$0xff] }
  0xad   :  { %v903_v34 = vpop.eup %902  ;;  %v250_v41 = vadd.f32 1.0, %v901_v33  ;;  %s981_s1 = smov 0.001  }
  0xae   :  { %908 = vtanh.f32 %v236_v29  ;;  %v905_v38 = vpop.eup %904  ;;  %v251_v45 = vadd.f32 1.0, %v903_v34  ;;  %v277_v29 = vpop.permute.xlu2 %276  ;;  %s587_s26 = smax.f32 %s981_s1, %s1476_s3 }
  0xaf   :  { %910 = vtanh.f32 %v237_v30  ;;  %v907_v40 = vpop.eup %906  ;;  %v248_v52 = vadd.f32 1.0, %v905_v38  ;;  %v258_v58 = vmul.f32 %v250_v41, %v194_v48 }
  0xb0   :  { %v249_v57 = vadd.f32 1.0, %v907_v40  ;;  %v259_v62 = vmul.f32 %v251_v45, %v195_v54  ;;  %v282_v38 = vpop.permute.xlu0 %281 }
  0xb1   :  { %v153_v35 = vpop.f32.mrf.mxu0  ;;  %v182_v39 = vpop.f32.mrf.mxu1  ;;  %v256_v4 = vmul.f32 %v248_v52, %v192_v60 }
  0xb2   :  { %v257_v7 = vmul.f32 %v249_v57, %v193_v0  ;;  %v154_v17 = vadd.f32 %v153_v35, %v67_v37  ;;  %v183_v20 = vadd.f32 %v182_v39, %v67_v37  ;;  %v287_v52 = vpop.permute.xlu1 %286 }
  0xb3   :  { %v266_v9 = vpack.c.bf16 %v256_v4, %v254_v8 }
  0xb4   :  { %v909_v43 = vpop.eup %908  ;;  %v267_v10 = vpack.c.bf16 %v257_v7, %v255_v42  ;;  %v352_v25 = vpack.c.bf16 %v154_v17, %v152_v22  ;;  %v353_v27 = vpack.c.bf16 %v183_v20, %v181_v24 }
  0xb5   :  { %v911_v46 = vpop.eup %910  ;;  %v252_v50 = vadd.f32 1.0, %v909_v43 }
  0xb6   :  { %v253_v56 = vadd.f32 1.0, %v911_v46  ;;  %v292_v42 = vpop.permute.xlu2 %291 }
  0xb7   :  { %v260_v59 = vmul.f32 %v252_v50, %v196_v49 }
  0xb8   :  { %v261_v63 = vmul.f32 %v253_v56, %v197_v55 }
  0xb9   :  { %v156_v2 = vpop.f32.mrf.mxu0  ;;  %v268_v51 = vpack.c.bf16 %v260_v59, %v258_v58  ;;  %v185_v5 = vpop.f32.mrf.mxu1 }
  0xba   :  { %v269_v53 = vpack.c.bf16 %v261_v63, %v259_v62  ;;  %v157_v12 = vadd.f32 %v156_v2, %v72_v47  ;;  %v186_v36 = vadd.f32 %v185_v5, %v72_v47 }
  0xbb   :  { %316 = vmatpush.bf16.msra.mxu2 %v268_v51 }
  0xbc   :  { %335 = vmatpush.bf16.msra.mxu3 %v269_v53 }
  0xbf   :  { %317 = vmatpush.bf16.msra.mxu2 %v266_v9 }
  0xc0   :  { %336 = vmatpush.bf16.msra.mxu3 %v267_v10 }
  0xc1   :  { %v158_v13 = vpop.f32.mrf.mxu0  ;;  %v187_v15 = vpop.f32.mrf.mxu1 }
  0xc2   :  { %v159_v14 = vadd.f32 %v158_v13, %v77_v11  ;;  %855 = vmatmul.msk.bf16.vlgmr.msra.gmra.mxu2 %vm119_vm0, %v887_v44  ;;  %v188_v16 = vadd.f32 %v187_v15, %v77_v11 }
  0xc3   :  { %857 = vmatmul.msk.bf16.vlgmr.msra.gmra.mxu3 %vm119_vm0, %v887_v44 }
  0xc4   :  { %v354_v18 = vpack.c.bf16 %v159_v14, %v157_v12  ;;  %v355_v21 = vpack.c.bf16 %v188_v16, %v186_v36 }
  0xc6   :  { %402 = vmatpush.bf16.msrb.mxu2 %v354_v18  ;;  %421 = vmatpush.bf16.msrb.mxu3 %v355_v21 }
  0xca   :  { %403 = vmatpush.bf16.msrb.mxu2 %v352_v25  ;;  %422 = vmatpush.bf16.msrb.mxu3 %v353_v27 }
  0xd2   :  { %856 = vmatmul.msk.bf16.gmra.mxu2 %vm119_vm0, %v888_v28 }
  0xd3   :  { %858 = vmatmul.msk.bf16.gmra.mxu3 %vm119_vm0, %v888_v28 }
  0xe2   :  { %867 = vmatmul.msk.bf16.vlgmr.msrb.gmra.mxu2 %vm119_vm0, %v889_v23 }
  0xe3   :  { %869 = vmatmul.msk.bf16.vlgmr.msrb.gmra.mxu3 %vm119_vm0, %v889_v23 }
  0xf2   :  { %868 = vmatmul.msk.bf16.gmra.mxu2 %vm119_vm0, %v890_v26 }
  0xf3   :  { %870 = vmatmul.msk.bf16.gmra.mxu3 %vm119_vm0, %v890_v26 }
 0x145   :  { %v319_v30 = vpop.f32.mrf.mxu2 }
 0x146   :  { %v320_v31 = vadd.f32 %v319_v30, %v277_v29  ;;  %v338_v32 = vpop.f32.mrf.mxu3 }
 0x147   :  { %v339_v33 = vadd.f32 %v338_v32, %v277_v29 }
 0x148   :  { %v871_v34 = vmul.f32 -1.442695, %v320_v31  ;;  %v1198_v31 = vstv %s587_s26 }
 0x149   :  { %v872_v35 = vmul.f32 -1.442695, %v339_v33 }
 0x14a   :  { %912 = vpow2.f32 %v871_v34 }
 0x14b   :  { %914 = vpow2.f32 %v872_v35 }
 0x14d   :  { %v321_v39 = vpop.f32.mrf.mxu2 }
 0x14e   :  { %v322_v40 = vadd.f32 %v321_v39, %v282_v38  ;;  %v340_v41 = vpop.f32.mrf.mxu3 }
 0x14f   :  { %v341_v43 = vadd.f32 %v340_v41, %v282_v38 }
 0x150   :  { %v913_v45 = vpop.eup %912  ;;  %v873_v46 = vmul.f32 -1.442695, %v322_v40 }
 0x151   :  { %v915_v47 = vpop.eup %914  ;;  %v458_v48 = vadd.f32 1.0, %v913_v45  ;;  %v874_v49 = vmul.f32 -1.442695, %v341_v43 }
 0x152   :  { %v459_v50 = vadd.f32 1.0, %v915_v47  ;;  %916 = vpow2.f32 %v873_v46 }
 0x153   :  { %918 = vrcp.f32 %v458_v48  ;;  %v475_v3 = vand.u32 2147483647, %v458_v48  ;;  %v477_v5 = vand.u32 2147483648, %v458_v48  ;;  %vm471_vm2 = vweird.f32 %v458_v48 }
 0x154   :  { %920 = vrcp.f32 %v459_v50  ;;  %v492_v6 = vand.u32 2147483648, %v459_v50  ;;  %v490_v10 = vand.u32 2147483647, %v459_v50  ;;  %vm486_vm5 = vweird.f32 %v459_v50 }
 0x155   :  { %922 = vpow2.f32 %v874_v49  ;;  %v324_v54 = vpop.f32.mrf.mxu2  ;;  %vm1173_vm4 = vcmp.eq.f32.partialorder %v475_v3, 8.507059e+37  ;;  %v478_v15 = vor.u32 1.1754944e-38, %v477_v5 }
 0x156   :  { %v325_v55 = vadd.f32 %v324_v54, %v287_v52  ;;  %v343_v56 = vpop.f32.mrf.mxu3  ;;  %v493_v16 = vor.u32 1.1754944e-38, %v492_v6  ;;  %vm491_vm8 = vcmp.eq.f32.partialorder %v490_v10, 8.507059e+37 }
 0x157   :  { %v344_v57 = vadd.f32 %v343_v56, %v287_v52 }
 0x158   :  { %v917_v58 = vpop.eup %916  ;;  %v875_v59 = vmul.f32 -1.442695, %v325_v55 }
 0x159   :  { %v919_v60 = vpop.eup %918  ;;  %v1167_v61 = vadd.f32 1.0, %v917_v58  ;;  %v876_v62 = vmul.f32 -1.442695, %v344_v57 }
 0x15a   :  { %v921_v63 = vpop.eup %920  ;;  %v467_v0 = vmul.f32 %v919_v60, %v458_v48  ;;  %924 = vpow2.f32 %v875_v59  ;;  %vm472_vm1 = vweird.f32 %v919_v60 }
 0x15b   :  { %v923_v1 = vpop.eup %922  ;;  %v482_v2 = vmul.f32 %v921_v63, %v459_v50  ;;  %926 = vrcp.f32 %v1167_v61  ;;  %vm487_vm3 = vweird.f32 %v921_v63  ;;  %vm473_vm6 = vmor %vm471_vm2, %vm472_vm1  ;;  %v507_v26 = vand.u32 2147483648, %v1167_v61 }
 0x15c   :  { %v468_v51 = vsub.f32 1.0, %v467_v0  ;;  %v1170_v4 = vadd.f32 1.0, %v923_v1  ;;  %928 = vpow2.f32 %v876_v62  ;;  %vm488_vm7 = vmor %vm486_vm5, %vm487_vm3  ;;  %v505_v33 = vand.u32 2147483647, %v1167_v61 }
 0x15d   :  { %v483_v53 = vsub.f32 1.0, %v482_v2  ;;  %v326_v7 = vpop.f32.mrf.mxu2  ;;  %vm501_vm10 = vweird.f32 %v1167_v61  ;;  %v508_v39 = vor.u32 1.1754944e-38, %v507_v26 }
 0x15e   :  { %v469_v8 = vmul.f32 %v919_v60, %v468_v51  ;;  %930 = vrcp.f32 %v1170_v4  ;;  %v345_v44 = vpop.f32.mrf.mxu3  ;;  %v327_v13 = vadd.f32 %v326_v7, %v292_v42  ;;  %v522_v40 = vand.u32 2147483648, %v1170_v4 }
 0x15f   :  { %v484_v9 = vmul.f32 %v921_v63, %v483_v53  ;;  %v346_v21 = vadd.f32 %v345_v44, %v292_v42  ;;  %v520_v45 = vand.u32 2147483647, %v1170_v4  ;;  %vm506_vm13 = vcmp.eq.f32.partialorder %v505_v33, 8.507059e+37 }
 0x160   :  { %v925_v11 = vpop.eup %924  ;;  %v470_v12 = vadd.f32 %v919_v60, %v469_v8  ;;  %v877_v20 = vmul.f32 -1.442695, %v327_v13  ;;  %vm516_vm14 = vweird.f32 %v1170_v4  ;;  %v523_v54 = vor.u32 1.1754944e-38, %v522_v40 }
 0x161   :  { %v927_v14 = vpop.eup %926  ;;  %v485_v37 = vadd.f32 %v921_v63, %v484_v9  ;;  %v1178_v17 = vadd.f32 1.0, %v925_v11  ;;  %v878_v34 = vmul.f32 -1.442695, %v346_v21  ;;  %vm521_vm0 = vcmp.eq.f32.partialorder %v520_v45, 8.507059e+37 }
 0x162   :  { %v474_v18 = vsel %vm473_vm6, %v919_v60, %v470_v12  ;;  %v497_v19 = vmul.f32 %v927_v14, %v1167_v61  ;;  %v929_v22 = vpop.eup %928  ;;  %vm502_vm9 = vweird.f32 %v927_v14 }
 0x163   :  { %v479_v24 = vsel %vm1173_vm4, %v478_v15, %v474_v18  ;;  %v489_v25 = vsel %vm488_vm7, %v921_v63, %v485_v37  ;;  %932 = vrcp.f32 %v1178_v17  ;;  %v1196_v30 = vadd.f32 1.0, %v929_v22  ;;  %vm503_vm11 = vmor %vm501_vm10, %vm502_vm9 }
 0x164   :  { %v931_v27 = vpop.eup %930  ;;  %795 = vst [vmem:[%s1477_s4 + $0x40] sm:$0xff] %v479_v24  ;;  %v494_v28 = vsel %vm491_vm8, %v493_v16, %v489_v25  ;;  %v498_v23 = vsub.f32 1.0, %v497_v19  ;;  %934 = vpow2.f32 %v877_v20  ;;  %v1206_v46 = vmul.f32 %v1198_v31, %v479_v24 }
 0x165   :  { %796 = vst [vmem:[%s1477_s4 + $0x48] sm:$0xff] %v494_v28  ;;  %v512_v29 = vmul.f32 %v931_v27, %v1170_v4  ;;  %936 = vrcp.f32 %v1196_v30  ;;  %vm517_vm12 = vweird.f32 %v931_v27  ;;  %v535_v59 = vand.u32 2147483647, %v1178_v17  ;;  %v405_v9 = vpop.f32.mrf.mxu2 }
 0x166   :  { %v499_v32 = vmul.f32 %v927_v14, %v498_v23  ;;  %938 = vpow2.f32 %v878_v34  ;;  %vm518_vm15 = vmor %vm516_vm14, %vm517_vm12  ;;  %v537_v60 = vand.u32 2147483648, %v1178_v17  ;;  %v1224_v1 = vmul.f32 %v1198_v31, %v494_v28  ;;  %v424_v24 = vpop.f32.mrf.mxu3 }
 0x167   :  { %v513_v35 = vsub.f32 1.0, %v512_v29  ;;  %940 = vrcp.f32 %v1206_v46  ;;  %vm531_vm2 = vweird.f32 %v1178_v17  ;;  %vm536_vm4 = vcmp.eq.f32.partialorder %v535_v59, 8.507059e+37 }
 0x168   :  { %v500_v38 = vadd.f32 %v927_v14, %v499_v32  ;;  %v538_v5 = vor.u32 1.1754944e-38, %v537_v60  ;;  %v550_v53 = vand.u32 2147483647, %v1196_v30  ;;  %v552_v6 = vand.u32 2147483648, %v1196_v30 }
 0x169   :  { %v933_v41 = vpop.eup %932  ;;  %v514_v43 = vmul.f32 %v931_v27, %v513_v35  ;;  %vm546_vm6 = vweird.f32 %v1196_v30 }
 0x16a   :  { %v504_v47 = vsel %vm503_vm11, %v927_v14, %v500_v38  ;;  %v527_v48 = vmul.f32 %v933_v41, %v1178_v17  ;;  %v935_v49 = vpop.eup %934  ;;  %vm532_vm1 = vweird.f32 %v933_v41  ;;  %v553_v36 = vor.u32 1.1754944e-38, %v552_v6  ;;  %v368_v6 = vpop.permute.xlu1 %367 }
 0x16b   :  { %v509_v50 = vsel %vm506_vm13, %v508_v39, %v504_v47  ;;  %v515_v52 = vadd.f32 %v931_v27, %v514_v43  ;;  %v1214_v56 = vadd.f32 1.0, %v935_v49  ;;  %v937_v57 = vpop.eup %936  ;;  %vm533_vm3 = vmor %vm531_vm2, %vm532_vm1  ;;  %vm551_vm8 = vcmp.eq.f32.partialorder %v550_v53, 8.507059e+37  ;;  %v363_v49 = vpop.permute.xlu0 %362 }
 0x16c   :  { %797 = vst [vmem:[%s1477_s4 + $0x50] sm:$0xff] %v509_v50  ;;  %v528_v55 = vsub.f32 1.0, %v527_v48  ;;  %v939_v61 = vpop.eup %938  ;;  %v542_v0 = vmul.f32 %v937_v57, %v1196_v30  ;;  %vm547_vm5 = vweird.f32 %v937_v57  ;;  %v1242_v11 = vmul.f32 %v1198_v31, %v509_v50 }
 0x16d   :  { %v519_v58 = vsel %vm518_vm15, %v931_v27, %v515_v52  ;;  %942 = vrcp.f32 %v1214_v56  ;;  %v1227_v3 = vadd.f32 1.0, %v939_v61  ;;  %v1229_v4 = vpop.eup %940  ;;  %vm548_vm7 = vmor %vm546_vm6, %vm547_vm5  ;;  %v565_v18 = vand.u32 2147483647, %v1214_v56  ;;  %v407_v34 = vpop.f32.mrf.mxu2 }
 0x16e   :  { %v524_v62 = vsel %vm521_vm0, %v523_v54, %v519_v58  ;;  %v529_v63 = vmul.f32 %v933_v41, %v528_v55  ;;  %v543_v51 = vsub.f32 1.0, %v542_v0  ;;  %v598_v10 = vmul.f32 %v1229_v4, %v1206_v46  ;;  %v426_v0 = vpop.f32.mrf.mxu3 }
 0x16f   :  { %798 = vst [vmem:[%s1477_s4 + $0x58] sm:$0xff] %v524_v62  ;;  %944 = vrcp.f32 %v1227_v3  ;;  %v567_v20 = vand.u32 2147483648, %v1214_v56  ;;  %vm561_vm10 = vweird.f32 %v1214_v56  ;;  %v1257_v28 = vmul.f32 %v1198_v31, %v524_v62 }
 0x170   :  { %v530_v2 = vadd.f32 %v933_v41, %v529_v63  ;;  %v544_v8 = vmul.f32 %v937_v57, %v543_v51  ;;  %946 = vrcp.f32 %v1224_v1  ;;  %v599_v37 = vsub.f32 1.0, %v598_v10 }
 0x171   :  { %948 = vrcp.f32 %v1242_v11  ;;  %vm566_vm11 = vcmp.eq.f32.partialorder %v565_v18, 8.507059e+37  ;;  %v582_v26 = vand.u32 2147483648, %v1227_v3  ;;  %v568_v30 = vor.u32 1.1754944e-38, %v567_v20  ;;  %v1335_v18 = vpop.permute.xlu2 %372 }
 0x172   :  { %v534_v7 = vsel %vm533_vm3, %v933_v41, %v530_v2  ;;  %v545_v44 = vadd.f32 %v937_v57, %v544_v8  ;;  %v600_v27 = vmul.f32 %v1229_v4, %v599_v37  ;;  %v580_v33 = vand.u32 2147483647, %v1227_v3 }
 0x173   :  { %v539_v42 = vsel %vm536_vm4, %v538_v5, %v534_v7  ;;  %v943_v12 = vpop.eup %942  ;;  %vm576_vm14 = vweird.f32 %v1227_v3  ;;  %vm603_vm15 = vweird.f32 %v1229_v4  ;;  %950 = vrcp.f32 %v1257_v28 }
 0x174   :  { %799 = vst [vmem:[%s1477_s4 + $0x60] sm:$0xff] %v539_v42  ;;  %v549_v13 = vsel %vm548_vm7, %v937_v57, %v545_v44  ;;  %v557_v14 = vmul.f32 %v943_v12, %v1214_v56  ;;  %vm562_vm9 = vweird.f32 %v943_v12  ;;  %v601_v41 = vadd.f32 %v1229_v4, %v600_v27 }
 0x175   :  { %v554_v15 = vsel %vm551_vm8, %v553_v36, %v549_v13  ;;  %v945_v16 = vpop.eup %944  ;;  %vm563_vm12 = vmor %vm561_vm10, %vm562_vm9  ;;  %v583_v45 = vor.u32 1.1754944e-38, %v582_v26  ;;  %vm602_vm1 = vweird.f32 %v1206_v46  ;;  %v608_v47 = vand.u32 2147483648, %v1206_v46 }
 0x176   :  { %800 = vst [vmem:[%s1477_s4 + $0x68] sm:$0xff] %v554_v15  ;;  %v558_v17 = vsub.f32 1.0, %v557_v14  ;;  %v1250_v19 = vpop.eup %946  ;;  %v572_v21 = vmul.f32 %v945_v16, %v1227_v3  ;;  %vm577_vm13 = vweird.f32 %v945_v16  ;;  %vm581_vm2 = vcmp.eq.f32.partialorder %v580_v33, 8.507059e+37  ;;  %vm1282_vm3 = vmor %vm602_vm1, %vm603_vm15 }
 0x177   :  { %v613_v29 = vmul.f32 %v1250_v19, %v1224_v1  ;;  %v1263_v35 = vpop.eup %948  ;;  %vm578_vm0 = vmor %vm576_vm14, %vm577_vm13  ;;  %v606_v52 = vand.u32 2147483647, %v1206_v46  ;;  %v1278_v54 = vmul.f32 %v1198_v31, %v539_v42  ;;  %v406_v56 = vadd.f32 %v405_v9, %v363_v49  ;;  %v410_v9 = vpop.f32.mrf.mxu2 }
 0x178   :  { %v559_v22 = vmul.f32 %v943_v12, %v558_v17  ;;  %v573_v25 = vsub.f32 1.0, %v572_v21  ;;  %v628_v43 = vmul.f32 %v1263_v35, %v1242_v11  ;;  %v605_v58 = vsel %vm1282_vm3, %v1229_v4, %v601_v41 }
 0x179   :  { %v614_v48 = vsub.f32 1.0, %v613_v29  ;;  %v623_v46 = vand.u32 2147483648, %v1224_v1  ;;  %952 = vrcp.f32 %v1278_v54  ;;  %v1294_v60 = vpop.eup %950  ;;  %v609_v61 = vor.u32 1.1754944e-38, %v608_v47 }
 0x17a   :  { %v560_v23 = vadd.f32 %v943_v12, %v559_v22  ;;  %v574_v32 = vmul.f32 %v945_v16, %v573_v25  ;;  %v629_v59 = vsub.f32 1.0, %v628_v43  ;;  %v1296_v62 = vadd.f32 %v424_v24, %v363_v49 }
 0x17b   :  { %v615_v63 = vmul.f32 %v1250_v19, %v614_v48  ;;  %v1300_v2 = vmul.f32 %v1198_v31, %v554_v15  ;;  %vm607_vm4 = vcmp.eq.f32.partialorder %v606_v52, 8.507059e+37  ;;  %v636_v51 = vand.u32 2147483647, %v1242_v11 }
 0x17c   :  { %v564_v38 = vsel %vm563_vm12, %v943_v12, %v560_v23  ;;  %v575_v40 = vadd.f32 %v945_v16, %v574_v32  ;;  %v638_v3 = vand.u32 2147483648, %v1242_v11  ;;  %v610_v5 = vsel %vm607_vm4, %v609_v61, %v605_v58 }
 0x17d   :  { %v569_v39 = vsel %vm566_vm11, %v568_v30, %v564_v38  ;;  %vm617_vm5 = vweird.f32 %v1224_v1  ;;  %v621_v53 = vand.u32 2147483647, %v1224_v1  ;;  %954 = vrcp.f32 %v1300_v2  ;;  %v429_v38 = vpop.f32.mrf.mxu3 }
 0x17e   :  { %801 = vst [vmem:[%s1477_s4 + $0x70] sm:$0xff] %v569_v39  ;;  %v579_v50 = vsel %vm578_vm0, %v945_v16, %v575_v40  ;;  %v1305_v4 = vmul.f32 %v1198_v31, %v569_v39  ;;  %v1310_v7 = vor.u32 1.1754944e-38, %v623_v46  ;;  %v630_v8 = vmul.f32 %v1263_v35, %v629_v59  ;;  %v378_v46 = vpop.permute.xlu0 %377 }
 0x17f   :  { %v584_v55 = vsel %vm581_vm2, %v583_v45, %v579_v50  ;;  %v643_v42 = vmul.f32 %v1294_v60, %v1257_v28  ;;  %v1317_v10 = vadd.f32 %v1250_v19, %v615_v63  ;;  %vm618_vm6 = vweird.f32 %v1250_v19  ;;  %v953_v12 = vpop.eup %952  ;;  %v412_v50 = vpop.f32.mrf.mxu2 }
 0x180   :  { %802 = vst [vmem:[%s1477_s4 + $0x78] sm:$0xff] %v584_v55  ;;  %956 = vrcp.f32 %v1305_v4  ;;  %v1320_v44 = vadd.f32 %v407_v34, %v368_v6  ;;  %vm632_vm7 = vweird.f32 %v1242_v11  ;;  %v1323_v36 = vmul.f32 %v610_v5, %v406_v56  ;;  %vm1339_vm10 = vmor %vm617_vm5, %vm618_vm6 }
 0x181   :  { %vm1325_vm8 = vcmp.eq.f32.partialorder %v636_v51, 8.507059e+37  ;;  %v639_v14 = vor.u32 1.1754944e-38, %v638_v3  ;;  %v1329_v15 = vadd.f32 %v426_v0, %v368_v6  ;;  %vm633_vm9 = vweird.f32 %v1263_v35 }
 0x182   :  { %v651_v37 = vand.u32 2147483647, %v1257_v28  ;;  %v658_v16 = vmul.f32 %v953_v12, %v1278_v54  ;;  %v666_v17 = vand.u32 2147483647, %v1278_v54  ;;  %v631_v21 = vadd.f32 %v1263_v35, %v630_v8  ;;  %vm1366_vm14 = vmor %vm632_vm7, %vm633_vm9 }
 0x183   :  { %v644_v22 = vsub.f32 1.0, %v643_v42  ;;  %v668_v24 = vand.u32 2147483648, %v1278_v54  ;;  %v1346_v25 = vmul.f32 %v1198_v31, %v584_v55  ;;  %v1348_v27 = vpop.eup %954  ;;  %v620_v23 = vsel %vm1339_vm10, %v1250_v19, %v1317_v10 }
 0x184   :  { %v653_v1 = vand.u32 2147483648, %v1257_v28  ;;  %v411_v26 = vadd.f32 %v410_v9, %v1335_v18  ;;  %v659_v29 = vsub.f32 1.0, %v658_v16  ;;  %vm647_vm11 = vweird.f32 %v1257_v28 }
 0x185   :  { %vm648_vm12 = vweird.f32 %v1294_v60  ;;  %vm662_vm13 = vweird.f32 %v1278_v54  ;;  %v673_v31 = vmul.f32 %v1348_v27, %v1300_v2  ;;  %958 = vrcp.f32 %v1346_v25 }
 0x186   :  { %v957_v30 = vpop.eup %956  ;;  %v660_v33 = vmul.f32 %v953_v12, %v659_v29  ;;  %vm663_vm15 = vweird.f32 %v953_v12  ;;  %vm1370_vm0 = vcmp.eq.f32.partialorder %v666_v17, 8.507059e+37  ;;  %v635_v40 = vsel %vm1366_vm14, %v1263_v35, %v631_v21  ;;  %vm1417_vm14 = vmor %vm647_vm11, %vm648_vm12 }
 0x187   :  { %v688_v39 = vmul.f32 %v957_v30, %v1305_v4  ;;  %v645_v41 = vmul.f32 %v1294_v60, %v644_v22  ;;  %v669_v11 = vor.u32 1.1754944e-38, %v668_v24  ;;  %v674_v43 = vsub.f32 1.0, %v673_v31  ;;  %vm664_vm2 = vmor %vm662_vm13, %vm663_vm15  ;;  %v431_v22 = vpop.f32.mrf.mxu3 }
 0x188   :  { %v661_v45 = vadd.f32 %v953_v12, %v660_v33  ;;  %vm677_vm1 = vweird.f32 %v1300_v2  ;;  %v681_v47 = vand.u32 2147483647, %v1300_v2  ;;  %vm678_vm3 = vweird.f32 %v1348_v27 }
 0x189   :  { %v689_v48 = vsub.f32 1.0, %v688_v39  ;;  %v675_v49 = vmul.f32 %v1348_v27, %v674_v43  ;;  %v696_v35 = vand.u32 2147483647, %v1305_v4  ;;  %v698_v52 = vand.u32 2147483648, %v1305_v4  ;;  %vm1402_vm6 = vmor %vm677_vm1, %vm678_vm3 }
 0x18a   :  { %vm1387_vm4 = vcmp.eq.f32.partialorder %v621_v53, 8.507059e+37  ;;  %v640_v56 = vsel %vm1325_vm8, %v639_v14, %v635_v40  ;;  %v665_v57 = vsel %vm664_vm2, %v953_v12, %v661_v45  ;;  %vm693_vm5 = vweird.f32 %v957_v30 }
 0x18b   :  { %v690_v58 = vmul.f32 %v957_v30, %v689_v48  ;;  %v959_v54 = vpop.eup %958  ;;  %v646_v59 = vadd.f32 %v1294_v60, %v645_v41  ;;  %v670_v61 = vsel %vm1370_vm0, %v669_v11, %v665_v57  ;;  %v676_v63 = vadd.f32 %v1348_v27, %v675_v49 }
 0x18c   :  { %v683_v0 = vand.u32 2147483648, %v1300_v2  ;;  %v413_v3 = vadd.f32 %v412_v50, %v378_v46  ;;  %vm692_vm7 = vweird.f32 %v1305_v4  ;;  %v703_v53 = vmul.f32 %v959_v54, %v1346_v25 }
 0x18d   :  { %v691_v5 = vadd.f32 %v957_v30, %v690_v58  ;;  %v641_v6 = vmul.f32 %v640_v56, %v1320_v44  ;;  %vm1409_vm8 = vcmp.eq.f32.partialorder %v681_v47, 8.507059e+37  ;;  %vm694_vm9 = vmor %vm692_vm7, %vm693_vm5  ;;  %vm697_vm13 = vcmp.eq.f32.partialorder %v696_v35, 8.507059e+37 }
 0x18e   :  { %v699_v42 = vor.u32 1.1754944e-38, %v698_v52  ;;  %v671_v4 = vmul.f32 %v670_v61, %v411_v26  ;;  %v680_v9 = vsel %vm1402_vm6, %v1348_v27, %v676_v63  ;;  %v704_v12 = vsub.f32 1.0, %v703_v53 }
 0x18f   :  { %v695_v44 = vsel %vm694_vm9, %v957_v30, %v691_v5  ;;  %v650_v13 = vsel %vm1417_vm14, %v1294_v60, %v646_v59  ;;  %v684_v14 = vor.u32 1.1754944e-38, %v683_v0  ;;  %v713_v17 = vand.u32 2147483648, %v1346_v25 }
 0x190   :  { %v700_v16 = vsel %vm697_vm13, %v699_v42, %v695_v44  ;;  %v705_v24 = vmul.f32 %v959_v54, %v704_v12  ;;  %vm708_vm11 = vweird.f32 %v959_v54  ;;  %v711_v26 = vand.u32 2147483647, %v1346_v25 }
 0x191   :  { %v701_v21 = vmul.f32 %v700_v16, %v413_v3  ;;  %vm652_vm12 = vcmp.eq.f32.partialorder %v651_v37, 8.507059e+37  ;;  %v654_v27 = vor.u32 1.1754944e-38, %v653_v1  ;;  %v430_v29 = vadd.f32 %v429_v38, %v1335_v18 }
 0x192   :  { %v685_v60 = vsel %vm1409_vm8, %v684_v14, %v680_v9  ;;  %v717_v30 = vmax.f32 %v1323_v36, %v671_v4  ;;  %v706_v32 = vadd.f32 %v959_v54, %v705_v24  ;;  %vm707_vm15 = vweird.f32 %v1346_v25 }
 0x193   :  { %v718_v31 = vmax.f32 %v641_v6, %v701_v21  ;;  %v625_v28 = vsel %vm1387_vm4, %v1310_v7, %v620_v23  ;;  %v655_v37 = vsel %vm652_vm12, %v654_v27, %v650_v13  ;;  %v432_v18 = vadd.f32 %v431_v22, %v378_v46  ;;  %vm709_vm0 = vmor %vm707_vm15, %vm708_vm11 }
 0x194   :  { %v714_v1 = vor.u32 1.1754944e-38, %v713_v17  ;;  %v686_v33 = vmul.f32 %v685_v60, %v430_v29  ;;  %v710_v38 = vsel %vm709_vm0, %v959_v54, %v706_v32  ;;  %vm712_vm1 = vcmp.eq.f32.partialorder %v711_v26, 8.507059e+37 }
 0x195   :  { %v719_v34 = vmax.f32 %v717_v30, %v718_v31  ;;  %v626_v25 = vmul.f32 %v625_v28, %v1296_v62  ;;  %v656_v20 = vmul.f32 %v655_v37, %v1329_v15 }
 0x196   :  { %v715_v39 = vsel %vm712_vm1, %v714_v1, %v710_v38 }
 0x197   :  { %v720_v40 = vrot.slane %v719_v34, 4  ;;  %v716_v41 = vmul.f32 %v715_v39, %v432_v18  ;;  %v726_v19 = vmax.f32 %v626_v25, %v686_v33 }
 0x199   :  { %v721_v10 = vmax.f32 %v719_v34, %v720_v40  ;;  %v727_v11 = vmax.f32 %v656_v20, %v716_v41 }
 0x19b   :  { %v722_v43 = vrot.slane %v721_v10, 2  ;;  %v728_v7 = vmax.f32 %v726_v19, %v727_v11 }
 0x19d   :  { %v723_v23 = vmax.f32 %v721_v10, %v722_v43  ;;  %v729_v45 = vrot.slane %v728_v7, 4 }
 0x19f   :  { %v724_v47 = vrot.slane %v723_v23, 1  ;;  %v730_v48 = vmax.f32 %v728_v7, %v729_v45 }
 0x1a1   :  { %v725_v49 = vmax.f32 %v723_v23, %v724_v47  ;;  %v731_v50 = vrot.slane %v730_v48, 2 }
 0x1a3   :  { %v735_v35 = vsub.f32 %v1323_v36, %v725_v49  ;;  %v737_v52 = vsub.f32 %v641_v6, %v725_v49  ;;  %v739_v55 = vsub.f32 %v671_v4, %v725_v49  ;;  %v741_v62 = vsub.f32 %v701_v21, %v725_v49 }
 0x1a4   :  { %v732_v56 = vmax.f32 %v730_v48, %v731_v50 }
 0x1a5   :  { %v743_v15 = vmul.f32 1.442695, %v735_v35  ;;  %v747_v57 = vmul.f32 1.442695, %v737_v52  ;;  %v751_v58 = vmul.f32 1.442695, %v739_v55 }
 0x1a6   :  { %v733_v54 = vrot.slane %v732_v56, 1  ;;  %v755_v46 = vmul.f32 1.442695, %v741_v62 }
 0x1a7   :  { %960 = vpow2.f32 %v743_v15 }
 0x1a8   :  { %962 = vpow2.f32 %v747_v57  ;;  %v734_v59 = vmax.f32 %v732_v56, %v733_v54 }
 0x1a9   :  { %964 = vpow2.f32 %v751_v58 }
 0x1aa   :  { %v736_v61 = vsub.f32 %v626_v25, %v734_v59  ;;  %v738_v63 = vsub.f32 %v656_v20, %v734_v59  ;;  %v740_v0 = vsub.f32 %v686_v33, %v734_v59  ;;  %v742_v51 = vsub.f32 %v716_v41, %v734_v59 }
 0x1ab   :  { %966 = vpow2.f32 %v755_v46 }
 0x1ac   :  { %v745_v3 = vmul.f32 1.442695, %v736_v61  ;;  %v749_v36 = vmul.f32 1.442695, %v738_v63  ;;  %v753_v53 = vmul.f32 1.442695, %v740_v0 }
 0x1ad   :  { %v961_v5 = vpop.eup %960  ;;  %v757_v42 = vmul.f32 1.442695, %v742_v51 }
 0x1ae   :  { %v963_v6 = vpop.eup %962  ;;  %968 = vpow2.f32 %v745_v3 }
 0x1af   :  { %v759_v8 = vadd.f32 %v963_v6, %v961_v5  ;;  %970 = vpow2.f32 %v749_v36  ;;  %v965_v2 = vpop.eup %964 }
 0x1b0   :  { %972 = vpow2.f32 %v753_v53 }
 0x1b1   :  { %v760_v4 = vadd.f32 %v965_v2, %v759_v8  ;;  %v967_v9 = vpop.eup %966  ;;  %974 = vpow2.f32 %v757_v42 }
 0x1b3   :  { %v761_v44 = vadd.f32 %v967_v9, %v760_v4 }
 0x1b4   :  { %v969_v12 = vpop.eup %968 }
 0x1b5   :  { %v971_v13 = vpop.eup %970  ;;  %v762_v14 = vrot.slane %v761_v44, 4 }
 0x1b6   :  { %v768_v16 = vadd.f32 %v971_v13, %v969_v12  ;;  %v973_v17 = vpop.eup %972 }
 0x1b7   :  { %v763_v21 = vadd.f32 %v762_v14, %v761_v44  ;;  %v975_v24 = vpop.eup %974 }
 0x1b8   :  { %v769_v22 = vadd.f32 %v973_v17, %v768_v16 }
 0x1b9   :  { %v764_v26 = vrot.slane %v763_v21, 2 }
 0x1ba   :  { %v770_v27 = vadd.f32 %v975_v24, %v769_v22 }
 0x1bb   :  { %v765_v29 = vadd.f32 %v764_v26, %v763_v21 }
 0x1bc   :  { %v771_v60 = vrot.slane %v770_v27, 4 }
 0x1bd   :  { %v766_v30 = vrot.slane %v765_v29, 1 }
 0x1be   :  { %v772_v31 = vadd.f32 %v771_v60, %v770_v27 }
 0x1bf   :  { %v767_v32 = vadd.f32 %v766_v30, %v765_v29 }
 0x1c0   :  { %v773_v28 = vrot.slane %v772_v31, 2 }
 0x1c1   :  { %976 = vrcp.f32 %v767_v32 }
 0x1c2   :  { %v774_v37 = vadd.f32 %v773_v28, %v772_v31 }
 0x1c4   :  { %v775_v18 = vrot.slane %v774_v37, 1 }
 0x1c6   :  { %v776_v1 = vadd.f32 %v775_v18, %v774_v37 }
 0x1c7   :  { %v977_v33 = vpop.eup %976 }
 0x1c8   :  { %v779_v34 = vmul.f32 %v977_v33, %v961_v5  ;;  %v781_v38 = vmul.f32 %v977_v33, %v963_v6  ;;  %v783_v39 = vmul.f32 %v977_v33, %v965_v2  ;;  %v785_v25 = vmul.f32 %v977_v33, %v967_v9 }
 0x1c9   :  { %978 = vrcp.f32 %v776_v1 }
 0x1ca   :  { %787 = vst [vmem:[%s1477_s4] sm:$0xff] %v779_v34 }
 0x1cb   :  { %789 = vst [vmem:[%s1477_s4 + $0x10] sm:$0xff] %v781_v38 }
 0x1cc   :  { %791 = vst [vmem:[%s1477_s4 + $0x20] sm:$0xff] %v783_v39 }
 0x1cd   :  { %793 = vst [vmem:[%s1477_s4 + $0x30] sm:$0xff] %v785_v25 }
 0x1cf   :  { %v979_v20 = vpop.eup %978 }
 0x1d0   :  { %v780_v40 = vmul.f32 %v979_v20, %v969_v12  ;;  %v782_v41 = vmul.f32 %v979_v20, %v971_v13  ;;  %v784_v19 = vmul.f32 %v979_v20, %v973_v17  ;;  %v786_v10 = vmul.f32 %v979_v20, %v975_v24 }
 0x1d2   :  { %788 = vst [vmem:[%s1477_s4 + $0x8] sm:$0xff] %v780_v40 }
 0x1d3   :  { %790 = vst [vmem:[%s1477_s4 + $0x18] sm:$0xff] %v782_v41 }
 0x1d4   :  { %792 = vst [vmem:[%s1477_s4 + $0x28] sm:$0xff] %v784_v19 }
 0x1d5   :  { %794 = vst [vmem:[%s1477_s4 + $0x38] sm:$0xff] %v786_v10 }

</bundles_post_ra>
